<compile_context>
chip_gen: v7x
topology: tpu7x:2x2x1
jax: 0.10.0
libtpu: 0.0.40
codegen_flags: <defaults>
</compile_context>

<pallas_src>
import jax
import jax.numpy as jnp
from jax.experimental import pallas as pl
from jax.experimental.pallas import tpu as pltpu


_LANE = 512                      # lane width of the 2-D view (multiple of 128)
_BLOCK_BYTES = 8 * 1024 * 1024   # per-input block (DMA granularity)
_NUM_SPLITS = 2                  # leading "parallel" grid axis (v7x megacore)


def _round_up(x: int, m: int) -> int:
    return ((x + m - 1) // m) * m


def _make_kernel(tr: int, steps: int, rows: int, need_mask: bool):
    """Build the reduction kernel with static tiling parameters closed over."""

    def kernel(o_ref, t_ref, out_ref, acc_ref):
        s = pl.program_id(0)          # split (parallel axis)
        i = pl.program_id(1)          # step within the split (reduction axis)

        @pl.when(i == 0)
        def _init():
            acc_ref[...] = jnp.zeros_like(acc_ref)

        # max(a,b) - min(a,b) == |a - b|  ->  one accumulator, ~3 VPU ops/elem.
        d = jnp.abs(o_ref[...].astype(jnp.float32) - t_ref[...].astype(jnp.float32))

        if need_mask:
            # Zero rows that lie beyond the logical array: covers the partial
            # last block (garbage rows in VMEM) and any clamped duplicate
            # block when nblocks does not divide evenly across splits*steps.
            block_idx = s * steps + i
            row_ids = block_idx * tr + jax.lax.broadcasted_iota(
                jnp.int32, (tr, _LANE), 0)
            d = jnp.where(row_ids < rows, d, 0.0)

        # Per-step sublane reduction into a resident (1, LANE) f32 accumulator.
        acc_ref[...] += jnp.sum(d, axis=0, keepdims=True)

        @pl.when(i == steps - 1)
        def _finalize():
            # Emit this split's (1, LANE) partial sums; the tiny cross-lane /
            # cross-split reduction happens in the wrapper.
            out_ref[...] = acc_ref[...].reshape(out_ref.shape)

    return kernel


def minmax_loss(outputs: jnp.ndarray, targets: jnp.ndarray) -> jnp.ndarray:
    """Pallas TPU forward of MinMaxLoss.  Returns a scalar float32."""
    outputs, targets = jnp.broadcast_arrays(outputs, targets)
    n = outputs.size

    o_flat = outputs.reshape(-1)
    t_flat = targets.reshape(-1)

    # Byte-budget, dtype-aware block sizing.
    sizes = [o_flat.dtype.itemsize, t_flat.dtype.itemsize]
    sub = max(8, 32 // min(sizes))                       # 8 f32 / 16 bf16 / 32 i8
    tr_max = max(sub, (_BLOCK_BYTES // (_LANE * max(sizes))) // sub * sub)

    rows = pl.cdiv(n, _LANE)
    tr = max(sub, min(tr_max, _round_up(pl.cdiv(rows, _NUM_SPLITS), sub)))

    # Pad ONLY when unavoidable: (a) n not a multiple of the 512-lane view, or
    # (b) the input is tiny (< one block of rows).  Padded zeros contribute
    # |0 - 0| = 0, and we divide by the true n below.  The common aligned case
    # is a pure reshape (no HBM copy).
    rows_padded = max(rows, tr)
    n_padded = rows_padded * _LANE
    if n_padded != n:
        o_flat = jnp.pad(o_flat, (0, n_padded - n))
        t_flat = jnp.pad(t_flat, (0, n_padded - n))
    o2d = o_flat.reshape(rows_padded, _LANE)
    t2d = t_flat.reshape(rows_padded, _LANE)

    nblocks = pl.cdiv(rows_padded, tr)
    splits = _NUM_SPLITS if nblocks >= _NUM_SPLITS else 1
    steps = pl.cdiv(nblocks, splits)
    # Masking is needed whenever the grid's row coverage exceeds the array
    # (partial last block and/or a clamped duplicate block).
    need_mask = (splits * steps * tr) != rows_padded

    last_block = nblocks - 1

    def in_index(s, i):
        # Clamp so a (rare) overhanging grid step re-reads the last valid
        # block; its contribution is fully masked out in the kernel.
        return (jnp.minimum(s * steps + i, last_block), 0)

    out = pl.pallas_call(
        _make_kernel(tr, steps, rows_padded, need_mask),
        out_shape=jax.ShapeDtypeStruct((splits, 1, _LANE), jnp.float32),
        grid_spec=pltpu.PrefetchScalarGridSpec(
            num_scalar_prefetch=0,
            grid=(splits, steps),
            in_specs=[
                pl.BlockSpec((tr, _LANE), in_index),
                pl.BlockSpec((tr, _LANE), in_index),
            ],
            # Output block constant across the reduction axis -> resident
            # accumulator; indexed by the parallel split axis.
            out_specs=pl.BlockSpec((1, 1, _LANE), lambda s, i: (s, 0, 0)),
            scratch_shapes=[
                pltpu.VMEM((1, _LANE), jnp.float32),     # |o - t| partial sums
            ],
        ),
        compiler_params=pltpu.CompilerParams(
            dimension_semantics=("parallel", "arbitrary"),
            vmem_limit_bytes=48 * 1024 * 1024,           # 32 MiB buffers + headroom
        ),
    )(o2d, t2d)

    # mean(max) - mean(min) == sum(|o - t|) / n   (true, unpadded count).
    return (jnp.sum(out) / jnp.float32(n)).astype(jnp.float32)


class MinMaxLoss:
    """JAX/Pallas port of the PyTorch MinMaxLoss module."""

    def __call__(self, outputs: jnp.ndarray, targets: jnp.ndarray) -> jnp.ndarray:
        return minmax_loss(outputs, targets)


if __name__ == "__main__":
    # Small deterministic example: batch=2, seq=8, hidden=32  (n = 512, aligned)
    B, L, D = 2, 8, 32
    key = jax.random.PRNGKey(0)
    k1, k2, k3, k4 = jax.random.split(key, 4)
    outputs = jax.random.normal(k1, (B, L, D), dtype=jnp.float32)
    targets = jax.random.normal(k2, (B, L, D), dtype=jnp.float32)

    loss_fn = MinMaxLoss()
    loss = jax.block_until_ready(loss_fn(outputs, targets))

    ref = jnp.maximum(outputs, targets).mean() - jnp.minimum(outputs, targets).mean()
    assert loss.shape == ()
    assert jnp.allclose(loss, ref, atol=1e-5, rtol=1e-5), (loss, ref)

    # Misaligned shape: exercises the lane pad + in-kernel ragged-row mask +
    # 2-way parallel split with a partial last block.
    o2 = jax.random.normal(k3, (3, 37, 129), dtype=jnp.float32)
    t2 = jax.random.normal(k4, (3, 37, 129), dtype=jnp.float32)
    loss2 = jax.block_until_ready(loss_fn(o2, t2))
    ref2 = jnp.maximum(o2, t2).mean() - jnp.minimum(o2, t2).mean()
    assert jnp.allclose(loss2, ref2, atol=1e-5, rtol=1e-5), (loss2, ref2)

    print("KERNEL_OK")
</pallas_src>

<mosaic_0001>
module attributes {stable_mosaic.version = 11 : i64} {
  func.func @kernel(%arg0: i32, %arg1: i32, %arg2: memref<8x512xf32, #tpu.memory_space<vmem>>, %arg3: memref<8x512xf32, #tpu.memory_space<vmem>>, %arg4: memref<1x1x512xf32, #tpu.memory_space<vmem>>, %arg5: memref<1x512xf32, #tpu.memory_space<vmem>>) attributes {dimension_semantics = [#tpu.dimension_semantics<parallel>, #tpu.dimension_semantics<arbitrary>], iteration_bounds = array<i64: 1, 1>, scalar_prefetch = 0 : i64, scratch_operands = 1 : i64, tpu.core_type = #tpu.core_type<tc>, window_params = [{transform_indices = @transform_0, window_bounds = array<i64: 8, 512>}, {transform_indices = @transform_1, window_bounds = array<i64: 8, 512>}, {transform_indices = @transform_2, window_bounds = array<i64: 1, 1, 512>}]} {
    %c0_i32 = arith.constant 0 : i32
    %0 = arith.cmpi eq, %arg1, %c0_i32 : i32
    %1 = arith.extui %0 : i1 to i32
    %c0_i32_0 = arith.constant 0 : i32
    %2 = arith.cmpi ne, %1, %c0_i32_0 : i32
    scf.if %2 {
      %cst_10 = arith.constant 0.000000e+00 : f32
      %15 = vector.broadcast %cst_10 : f32 to vector<1x512xf32>
      %c0_11 = arith.constant 0 : index
      %c0_12 = arith.constant 0 : index
      %16 = vector.load %arg5[%c0_11, %c0_12] : memref<1x512xf32, #tpu.memory_space<vmem>>, vector<1x512xf32>
      tpu.vector_store %arg5[%c0_11, %c0_12], %15 {strides = array<i32>} : memref<1x512xf32, #tpu.memory_space<vmem>>, vector<1x512xf32>,
    } else {
    }
    %c0 = arith.constant 0 : index
    %c0_1 = arith.constant 0 : index
    %3 = vector.load %arg2[%c0, %c0_1] : memref<8x512xf32, #tpu.memory_space<vmem>>, vector<8x512xf32>
    %c0_2 = arith.constant 0 : index
    %c0_3 = arith.constant 0 : index
    %4 = vector.load %arg3[%c0_2, %c0_3] : memref<8x512xf32, #tpu.memory_space<vmem>>, vector<8x512xf32>
    %5 = arith.subf %3, %4 : vector<8x512xf32>
    %6 = math.absf %5 : vector<8x512xf32>
    %c0_4 = arith.constant 0 : index
    %c0_5 = arith.constant 0 : index
    %7 = vector.load %arg5[%c0_4, %c0_5] : memref<1x512xf32, #tpu.memory_space<vmem>>, vector<1x512xf32>
    %cst = arith.constant dense<0.000000e+00> : vector<512xf32>
    %8 = vector.multi_reduction <add>, %6, %cst [0] : vector<8x512xf32> to vector<512xf32>
    %9 = vector.shape_cast %8 : vector<512xf32> to vector<1x512xf32>
    %10 = arith.addf %7, %9 : vector<1x512xf32>
    %c0_6 = arith.constant 0 : index
    %c0_7 = arith.constant 0 : index
    %11 = vector.load %arg5[%c0_6, %c0_7] : memref<1x512xf32, #tpu.memory_space<vmem>>, vector<1x512xf32>
    tpu.vector_store %arg5[%c0_6, %c0_7], %10 {strides = array<i32>} : memref<1x512xf32, #tpu.memory_space<vmem>>, vector<1x512xf32>,
    %c0_i32_8 = arith.constant 0 : i32
    %12 = arith.cmpi eq, %arg1, %c0_i32_8 : i32
    %13 = arith.extui %12 : i1 to i32
    %c0_i32_9 = arith.constant 0 : i32
    %14 = arith.cmpi ne, %13, %c0_i32_9 : i32
    scf.if %14 {
      %c0_10 = arith.constant 0 : index
      %c0_11 = arith.constant 0 : index
      %15 = vector.load %arg5[%c0_10, %c0_11] : memref<1x512xf32, #tpu.memory_space<vmem>>, vector<1x512xf32>
      %16 = vector.shape_cast %15 : vector<1x512xf32> to vector<1x1x512xf32>
      %c0_12 = arith.constant 0 : index
      %c0_13 = arith.constant 0 : index
      %c0_14 = arith.constant 0 : index
      %17 = vector.load %arg4[%c0_12, %c0_13, %c0_14] : memref<1x1x512xf32, #tpu.memory_space<vmem>>, vector<1x1x512xf32>
      tpu.vector_store %arg4[%c0_12, %c0_13, %c0_14], %16 {strides = array<i32>} : memref<1x1x512xf32, #tpu.memory_space<vmem>>, vector<1x1x512xf32>,
    } else {
    }
    return
  }
  func.func @transform_0(%arg0: i32, %arg1: i32) -> (i32, i32) {
    %c1_i32 = arith.constant 1 : i32
    %0 = arith.muli %arg0, %c1_i32 : i32
    %1 = arith.addi %0, %arg1 : i32
    %c0_i32 = arith.constant 0 : i32
    %2 = arith.minsi %1, %c0_i32 : i32
    %c0_i32_0 = arith.constant 0 : i32
    %c0_i32_1 = arith.constant 0 : i32
    return %2, %c0_i32_0 : i32, i32
  }
  func.func @transform_1(%arg0: i32, %arg1: i32) -> (i32, i32) {
    %c1_i32 = arith.constant 1 : i32
    %0 = arith.muli %arg0, %c1_i32 : i32
    %1 = arith.addi %0, %arg1 : i32
    %c0_i32 = arith.constant 0 : i32
    %2 = arith.minsi %1, %c0_i32 : i32
    %c0_i32_0 = arith.constant 0 : i32
    %c0_i32_1 = arith.constant 0 : i32
    return %2, %c0_i32_0 : i32, i32
  }
  func.func @transform_2(%arg0: i32, %arg1: i32) -> (i32, i32, i32) {
    %c0_i32 = arith.constant 0 : i32
    %c0_i32_0 = arith.constant 0 : i32
    %c0_i32_1 = arith.constant 0 : i32
    return %arg0, %c0_i32, %c0_i32_0 : i32, i32, i32
  }
}

</mosaic_0001>

<bundles_post_ra>
// kernel: tpu_custom_call.1
= control target key start
LH: loop header
LB: loop body
LE: loop exit
PB: predicated region body
PF: predicated region fallthrough
CT: control target
= control target key end

     0   :  { %7 = vsyncpa [#allocation4], 0  ;;  %s307_s0 = inlined_call_operand.hbm [shape: f32[8,512], index: 0, kind: input, shape index: {}]   ;;  %s308_s1 = inlined_call_operand.hbm [shape: f32[8,512], index: 1, kind: input, shape index: {}]   ;;  %s309_s2 = inlined_call_operand.hbm [shape: f32[1,1,512], index: 2, kind: output, shape index: {}]  }
   0x1   :  { %8 = vsyncpa [#allocation7], 0 }
   0x2   :  { %9 = vsyncpa [#allocation5], 0  ;;  %s241_s9 = smov [#allocation3]   ;;  %s242_s11 = smov [#allocation6]  }
   0x3   :  { %s22_s10 = sshll.u32 %s241_s9, 4  ;;  %s38_s12 = sshll.u32 %s242_s11, 4  ;;  %s23_s10 = int_to_ptr.vmem [resolvable:$true] %s22_s10  ;;  %s39_s12 = int_to_ptr.vmem [resolvable:$true] %s38_s12 }
   0x4   :  { %s169_s15 = scalar_lea.hbm %s307_s0, 512 }
   0x5   :  { %p170_p0 = scmp.ne.s32.totalorder %s307_s0, %s169_s15  ;;  %p173_p1 = scmp.lt.u32.totalorder %s169_s15, %s307_s0 }
   0x7   :  { %p175_p2 = pnand %p173_p1, %p170_p0 }
   0x9   :  { %178 = shalt.err (!%p175_p2)
}
   0xa   :  { %s179_s20 = scalar_lea.vmem %s23_s10, 512  ;;  %p184_p4 = scmp.lt.s32.totalorder %s23_s10, %s23_s10 }
   0xb   :  { %p180_p3 = scmp.ne.s32.totalorder %s23_s10, %s179_s20  ;;  %p185_p5 = scmp.lt.s32.totalorder %s179_s20, %s179_s20 }
   0xd   :  { %p186_p6 = por %p185_p5, %p184_p4 }
   0xf   :  { %p187_p7 = pnand %p186_p6, %p180_p3 }
  0x11   :  { %190 = shalt.err (!%p187_p7)
}
  0x12   :  { %25 = dma.hbm_to_vmem [thread:$0]  %s307_s0, 512, %s23_s10, [#allocation4]  }
  0x13   :  { %s191_s25 = scalar_lea.hbm %s308_s1, 512 }
  0x14   :  { %p192_p8 = scmp.ne.s32.totalorder %s308_s1, %s191_s25  ;;  %p195_p9 = scmp.lt.u32.totalorder %s191_s25, %s308_s1 }
  0x16   :  { %p197_p10 = pnand %p195_p9, %p192_p8 }
  0x18   :  { %200 = shalt.err (!%p197_p10)
}
  0x19   :  { %s201_s30 = scalar_lea.vmem %s39_s12, 512  ;;  %p206_p12 = scmp.lt.s32.totalorder %s39_s12, %s39_s12 }
  0x1a   :  { %p202_p11 = scmp.ne.s32.totalorder %s39_s12, %s201_s30  ;;  %p207_p13 = scmp.lt.s32.totalorder %s201_s30, %s201_s30 }
  0x1c   :  { %p208_p0 = por %p207_p13, %p206_p12 }
  0x1e   :  { %p209_p1 = pnand %p208_p0, %p202_p11 }
  0x20   :  { %212 = shalt.err (!%p209_p1)
}
  0x21   :  { %41 = dma.hbm_to_vmem [thread:$0]  %s308_s1, 512, %s39_s12, [#allocation7]  }
  0x22   :  { %235 = dma.done.wait [#allocation4], 512  }
  0x23   :  { %236 = vsyncadd [#allocation4], 4294966784 }
  0x24   :  { %237 = dma.done.wait [#allocation7], 512  }
  0x25   :  { %238 = vsyncadd [#allocation7], 4294966784  ;;  %v58_v0 = vlaneseq  ;;  %v243_v2 = vmov 0.0   ;;  %v63_v3 = vld [vmem:[#allocation3] sm:$0xff]  ;;  %v64_v4 = vld [vmem:[#allocation3 + $0x8] sm:$0xff]  ;;  %s245_s1 = smov [#allocation8]  }
  0x26   :  { %v65_v5 = vld [vmem:[#allocation3 + $0x10] sm:$0xff]  ;;  %v66_v6 = vld [vmem:[#allocation3 + $0x18] sm:$0xff]  ;;  %v67_v7 = vld [vmem:[#allocation6] sm:$0xff]  ;;  %v244_v25 = vmov 1966171168   ;;  %s150_s4 = sshll.u32 %s245_s1, 4  ;;  %s151_s4 = int_to_ptr.vmem [resolvable:$true] %s150_s4 }
  0x27   :  { %vm285_vm0 = vcmp.lt.s32.totalorder %v58_v0, 512  ;;  %v68_v8 = vld [vmem:[#allocation6 + $0x8] sm:$0xff]  ;;  %v69_v9 = vld [vmem:[#allocation6 + $0x10] sm:$0xff]  ;;  %v70_v10 = vld [vmem:[#allocation6 + $0x18] sm:$0xff]  ;;  %v71_v11 = vsub.f32 %v63_v3, %v67_v7  ;;  %v111_v26 = vunpack.c.l.s4 %v244_v25  ;;  %v114_v36 = vshrl.u32 %v58_v0, 7  ;;  %s213_s5 = scalar_lea.vmem %s151_s4, 64  ;;  %p218_p3 = scmp.lt.s32.totalorder %s151_s4, %s151_s4 }
  0x28   :  { %62 = vst.msk [vmem:[#allocation2] sm:$0xf] %vm285_vm0, %v243_v2  ;;  %v72_v12 = vsub.f32 %v64_v4, %v68_v8  ;;  %v73_v13 = vsub.f32 %v65_v5, %v69_v9  ;;  %v74_v14 = vsub.f32 %v66_v6, %v70_v10  ;;  %p214_p2 = scmp.ne.s32.totalorder %s151_s4, %s213_s5  ;;  %p219_p4 = scmp.lt.s32.totalorder %s213_s5, %s213_s5 }
  0x29   :  { %v75_v15 = vand.u32 2147483647, %v71_v11  ;;  %v112_v35 = vunpack.c.0.s8 %v111_v26 }
  0x2a   :  { %v76_v16 = vand.u32 2147483647, %v72_v12  ;;  %v77_v17 = vand.u32 2147483647, %v73_v13  ;;  %v78_v18 = vand.u32 2147483647, %v74_v14  ;;  %p220_p5 = por %p219_p4, %p218_p3 }
  0x2b   :  { %v80_v19 = vrot.slane %v75_v15, 4  ;;  %v115_v45 = vsub.s32 %v112_v35, %v114_v36 }
  0x2c   :  { %v86_v20 = vrot.slane %v76_v16, 4  ;;  %v92_v21 = vrot.slane %v77_v17, 4  ;;  %v98_v22 = vrot.slane %v78_v18, 4  ;;  %p221_p6 = pnand %p220_p5, %p214_p2 }
  0x2d   :  { %v81_v23 = vadd.f32 %v80_v19, %v75_v15 }
  0x2e   :  { %v87_v24 = vadd.f32 %v86_v20, %v76_v16  ;;  %v93_v27 = vadd.f32 %v92_v21, %v77_v17  ;;  %v99_v28 = vadd.f32 %v98_v22, %v78_v18 }
  0x2f   :  { %v82_v29 = vrot.slane %v81_v23, 2  ;;  %v79_v53 = vld [vmem:[#allocation2] sm:$0xf] }
  0x30   :  { %v88_v30 = vrot.slane %v87_v24, 2  ;;  %v94_v31 = vrot.slane %v93_v27, 2  ;;  %v100_v32 = vrot.slane %v99_v28, 2 }
  0x31   :  { %v83_v33 = vadd.f32 %v82_v29, %v81_v23 }
  0x32   :  { %v89_v34 = vadd.f32 %v88_v30, %v87_v24  ;;  %v95_v37 = vadd.f32 %v94_v31, %v93_v27  ;;  %v101_v38 = vadd.f32 %v100_v32, %v99_v28 }
  0x33   :  { %v84_v39 = vrot.slane %v83_v33, 1 }
  0x34   :  { %v90_v40 = vrot.slane %v89_v34, 1  ;;  %v96_v41 = vrot.slane %v95_v37, 1  ;;  %v102_v42 = vrot.slane %v101_v38, 1 }
  0x35   :  { %v85_v43 = vadd.f32 %v84_v39, %v83_v33 }
  0x36   :  { %v91_v44 = vadd.f32 %v90_v40, %v89_v34  ;;  %v97_v46 = vadd.f32 %v96_v41, %v95_v37  ;;  %v103_v47 = vadd.f32 %v102_v42, %v101_v38 }
  0x38   :  { %v108_v48 = vcombine.low %v85_v43, %v91_v44  ;;  %v109_v49 = vcombine.low %v97_v46, %v103_v47 }
  0x3a   :  { %v116_v50 = vrot.slane %v108_v48, %v115_v45  ;;  %v123_v51 = vrot.slane %v109_v49, %v115_v45 }
  0x3c   :  { %v124_v52 = vcombine.low %v116_v50, %v123_v51 }
  0x3e   :  { %v131_v54 = vrot.slane %v124_v52, %v115_v45 }
  0x40   :  { %v133_v55 = vadd.f32 %v131_v54, %v79_v53 }
  0x42   :  { %138 = vst.msk [vmem:[#allocation2] sm:$0xf] %vm285_vm0, %v133_v55 }
  0x49   :  { %v142_v56 = vld [vmem:[#allocation2] sm:$0xf] }
  0x4a   :  { %143 = vst.msk [vmem:[#allocation8] sm:$0xf] %vm285_vm0, %v142_v56 }
  0x4b   :  { %224 = shalt.err (!%p221_p6)
}
  0x4c   :  { %s225_s8 = scalar_lea.hbm %s309_s2, 64 }
  0x4d   :  { %p226_p7 = scmp.ne.s32.totalorder %s309_s2, %s225_s8  ;;  %p229_p8 = scmp.lt.u32.totalorder %s225_s8, %s309_s2 }
  0x4f   :  { %p231_p9 = pnand %p229_p8, %p226_p7 }
  0x51   :  { %234 = shalt.err (!%p231_p9)
}
  0x52   :  { %153 = dma.vmem_to_hbm [thread:$0]  %s151_s4, 64, %s309_s2, [#allocation5]  }
  0x53   :  { %239 = dma.done.wait [#allocation5], 64  }
  0x54   :  { %240 = vsyncadd [#allocation5], 4294967232 }
  0x55   :  { %157 = vsyncpa [#allocation4], 1 }
  0x56   :  { %158 = vsyncpa [#allocation7], 1 }
  0x57   :  { %159 = vsyncpa [#allocation5], 1 }

</bundles_post_ra>
